<compile_context>
chip_gen: v7x
topology: tpu7x:2x2x1
jax: 0.10.0
libtpu: 0.0.40
codegen_flags: <defaults>
</compile_context>

<pallas_src>
import functools

import jax
import jax.numpy as jnp
from jax.experimental import pallas as pl
from jax.experimental.pallas import tpu as pltpu


NUM_SLOTS = 2  # leading "parallel" grid axis (2 TensorCores on v7x; no-op elsewhere)


def _round_up(x: int, m: int) -> int:
    return (x + m - 1) // m * m


def _ls_ce_kernel(pred_ref, target_ref, out_ref, *, smoothing: float,
                  num_classes: int, num_rows: int, block_rows: int,
                  tiles_per_slot: int):
    confidence = 1.0 - smoothing
    s = pl.program_id(0)          # slot (core) index
    t = pl.program_id(1)          # reduction step within the slot

    # Initialize this slot's partial-sum block on its first reduction step.
    @pl.when(t == 0)
    def _():
        out_ref[...] = jnp.zeros_like(out_ref)

    x = pred_ref[...].astype(jnp.float32)                        # [TN, Cp]
    tn, cp = x.shape

    col = jax.lax.broadcasted_iota(jnp.int32, (tn, cp), 1)       # [TN, Cp]
    col_valid = col < num_classes                                # mask padded classes

    # Numerically stable logsumexp over the real classes only.
    x_m = jnp.where(col_valid, x, -1e30)
    m = jnp.max(x_m, axis=-1, keepdims=True)                     # [TN, 1]
    lse = m + jnp.log(jnp.sum(jnp.exp(x_m - m), axis=-1, keepdims=True))

    # Fused loss (log_probs never materialized):
    #   loss_row = lse - confidence * x[target] - smoothing * mean(x)
    tgt = target_ref[...]                                        # [TN, 1] int32
    x_tgt = jnp.sum(jnp.where(col == tgt, x, 0.0), axis=-1, keepdims=True)
    x_sum = jnp.sum(jnp.where(col_valid, x, 0.0), axis=-1, keepdims=True)
    row_loss = lse - confidence * x_tgt - smoothing * (x_sum / num_classes)

    # Mask batch-padding rows out of the accumulated sum.
    row = jax.lax.broadcasted_iota(jnp.int32, (tn, 1), 0)
    global_row = (s * tiles_per_slot + t) * block_rows + row
    row_valid = global_row < num_rows
    tile_sum = jnp.sum(jnp.where(row_valid, row_loss, 0.0))      # scalar

    # Accumulate into the slot's resident output block (every element holds
    # the running partial sum; wrapper reads element [0, 0]).
    out_ref[...] += tile_sum


def label_smoothing_cross_entropy(pred, target, smoothing: float = 0.1,
                                  vmem_budget_bytes: int = 16 * 1024 * 1024):
    """pred: [N, C] float (f32/bf16), target: [N] int -> scalar f32 loss."""
    n, c = pred.shape
    itemsize = jnp.dtype(pred.dtype).itemsize

    # Lane-dense class dim (multiple of 128).
    cp = _round_up(c, 128)

    # Native sublane multiple for this dtype (8 for f32, 16 for bf16, ...).
    sub = max(8, 32 // itemsize)

    # Row tile sized so a double-buffered pred tile fits the VMEM budget,
    # but never larger than the per-slot work actually available.
    tn_cap = vmem_budget_bytes // (2 * cp * itemsize)
    tn_cap = max(sub, min(1024, tn_cap // sub * sub))
    tn = min(tn_cap, _round_up(pl.cdiv(n, NUM_SLOTS), sub))
    tiles_per_slot = pl.cdiv(pl.cdiv(n, NUM_SLOTS), tn)
    n_pad = NUM_SLOTS * tiles_per_slot * tn

    # Pad inputs to the tile grid (contents of padded regions are masked
    # inside the kernel, so zero padding is fine).
    if n_pad == n and cp == c:
        pred_p = pred
    else:
        pred_p = jnp.zeros((n_pad, cp), dtype=pred.dtype).at[:n, :c].set(pred)
    tgt_p = jnp.zeros((n_pad, 1), dtype=jnp.int32).at[:n, 0].set(
        target.astype(jnp.int32))

    kernel = functools.partial(
        _ls_ce_kernel, smoothing=float(smoothing), num_classes=c, num_rows=n,
        block_rows=tn, tiles_per_slot=tiles_per_slot)

    cost = pl.CostEstimate(
        flops=5 * n_pad * cp,
        transcendentals=n_pad * cp,
        bytes_accessed=n_pad * cp * itemsize + n_pad * 4 + NUM_SLOTS * 8 * 128 * 4,
    )

    partial = pl.pallas_call(
        kernel,
        grid=(NUM_SLOTS, tiles_per_slot),
        in_specs=[
            pl.BlockSpec((tn, cp), lambda s, t: (s * tiles_per_slot + t, 0)),
            pl.BlockSpec((tn, 1), lambda s, t: (s * tiles_per_slot + t, 0)),
        ],
        out_specs=pl.BlockSpec((1, 8, 128), lambda s, t: (s, 0, 0)),
        out_shape=jax.ShapeDtypeStruct((NUM_SLOTS, 8, 128), jnp.float32),
        compiler_params=pltpu.CompilerParams(
            dimension_semantics=("parallel", "arbitrary")),
        cost_estimate=cost,
    )(pred_p, tgt_p)

    # Combine the per-slot partial sums; divide by the true batch size.
    return jnp.sum(partial[:, 0, 0]) / n
    # TODO(synk): no ignore_index semantics (PyTorch module above doesn't use it).


def _reference(pred, target, smoothing=0.1):
    confidence = 1.0 - smoothing
    log_probs = jax.nn.log_softmax(pred.astype(jnp.float32), axis=-1)
    nll = -jnp.take_along_axis(
        log_probs, target[:, None].astype(jnp.int32), axis=-1)[:, 0]
    smooth = -jnp.mean(log_probs, axis=-1)
    return jnp.mean(confidence * nll + smoothing * smooth)


if __name__ == "__main__":
    key = jax.random.PRNGKey(0)
    kp, kt = jax.random.split(key)

    # Small shapes consistent with the module: batch=8, num_classes=32.
    N, C = 8, 32
    pred = jax.random.normal(kp, (N, C), dtype=jnp.float32)
    target = jax.random.randint(kt, (N,), 0, C, dtype=jnp.int32)

    loss = jax.block_until_ready(
        label_smoothing_cross_entropy(pred, target, smoothing=0.1))
    ref = _reference(pred, target, smoothing=0.1)
    assert jnp.allclose(loss, ref, atol=1e-4, rtol=1e-4), (loss, ref)

    # Unaligned shapes: exercises class-padding and batch-row masking.
    N2, C2 = 13, 200
    pred2 = jax.random.normal(kp, (N2, C2), dtype=jnp.float32)
    target2 = jax.random.randint(kt, (N2,), 0, C2, dtype=jnp.int32)
    loss2 = jax.block_until_ready(
        label_smoothing_cross_entropy(pred2, target2, smoothing=0.1))
    ref2 = _reference(pred2, target2, smoothing=0.1)
    assert jnp.allclose(loss2, ref2, atol=1e-4, rtol=1e-4), (loss2, ref2)

    # bf16 logits: half the HBM traffic; f32 accumulation inside the kernel.
    pred_bf = pred.astype(jnp.bfloat16)
    loss_bf = jax.block_until_ready(
        label_smoothing_cross_entropy(pred_bf, target, smoothing=0.1))
    ref_bf = _reference(pred_bf.astype(jnp.float32), target, smoothing=0.1)
    assert jnp.allclose(loss_bf, ref_bf, atol=1e-3, rtol=1e-3), (loss_bf, ref_bf)

    print("KERNEL_OK")
</pallas_src>

<mosaic_0001>
module attributes {stable_mosaic.version = 11 : i64} {
  func.func @_ls_ce_kernel(%arg0: i32, %arg1: i32, %arg2: memref<8x128xf32, #tpu.memory_space<vmem>>, %arg3: memref<8x1xi32, #tpu.memory_space<vmem>>, %arg4: memref<1x8x128xf32, #tpu.memory_space<vmem>>) attributes {dimension_semantics = [#tpu.dimension_semantics<parallel>, #tpu.dimension_semantics<arbitrary>], iteration_bounds = array<i64: 2, 1>, scalar_prefetch = 0 : i64, scratch_operands = 0 : i64, tpu.core_type = #tpu.core_type<tc>, window_params = [{transform_indices = @transform_0, window_bounds = array<i64: 8, 128>}, {transform_indices = @transform_1, window_bounds = array<i64: 8, 1>}, {transform_indices = @transform_2, window_bounds = array<i64: 1, 8, 128>}]} {
    %c0_i32 = arith.constant 0 : i32
    %0 = arith.cmpi eq, %arg1, %c0_i32 : i32
    %1 = arith.extui %0 : i1 to i32
    %c0_i32_0 = arith.constant 0 : i32
    %2 = arith.cmpi ne, %1, %c0_i32_0 : i32
    scf.if %2 {
      %cst_22 = arith.constant 0.000000e+00 : f32
      %55 = vector.broadcast %cst_22 : f32 to vector<1x8x128xf32>
      %c0_23 = arith.constant 0 : index
      %c0_24 = arith.constant 0 : index
      %c0_25 = arith.constant 0 : index
      %56 = vector.load %arg4[%c0_23, %c0_24, %c0_25] : memref<1x8x128xf32, #tpu.memory_space<vmem>>, vector<1x8x128xf32>
      tpu.vector_store %arg4[%c0_23, %c0_24, %c0_25], %55 {strides = array<i32>} : memref<1x8x128xf32, #tpu.memory_space<vmem>>, vector<1x8x128xf32>,
    } else {
    }
    %c0 = arith.constant 0 : index
    %c0_1 = arith.constant 0 : index
    %3 = vector.load %arg2[%c0, %c0_1] : memref<8x128xf32, #tpu.memory_space<vmem>>, vector<8x128xf32>
    %4 = tpu.iota {dimensions = array<i32: 1>} : vector<8x128xi32>
    %c32_i32 = arith.constant 32 : i32
    %5 = vector.broadcast %c32_i32 : i32 to vector<8x128xi32>
    %6 = arith.cmpi slt, %4, %5 : vector<8x128xi32>
    %cst = arith.constant -1.000000e+30 : f32
    %7 = vector.broadcast %cst : f32 to vector<8x128xf32>
    %8 = arith.select %6, %3, %7 : vector<8x128xi1>, vector<8x128xf32>
    %cst_2 = arith.constant dense<0xFF800000> : vector<8xf32>
    %9 = vector.multi_reduction <maximumf>, %8, %cst_2 [1] : vector<8x128xf32> to vector<8xf32>
    %10 = vector.shape_cast %9 : vector<8xf32> to vector<8x1xf32>
    %11 = vector.broadcast %10 : vector<8x1xf32> to vector<8x128xf32>
    %12 = arith.subf %8, %11 : vector<8x128xf32>
    %13 = math.exp %12 : vector<8x128xf32>
    %cst_3 = arith.constant dense<0.000000e+00> : vector<8xf32>
    %14 = vector.multi_reduction <add>, %13, %cst_3 [1] : vector<8x128xf32> to vector<8xf32>
    %15 = vector.shape_cast %14 : vector<8xf32> to vector<8x1xf32>
    %16 = math.log %15 : vector<8x1xf32>
    %17 = arith.addf %10, %16 : vector<8x1xf32>
    %c0_4 = arith.constant 0 : index
    %c0_5 = arith.constant 0 : index
    %18 = vector.load %arg3[%c0_4, %c0_5] : memref<8x1xi32, #tpu.memory_space<vmem>>, vector<8x1xi32>
    %19 = vector.broadcast %18 : vector<8x1xi32> to vector<8x128xi32>
    %20 = arith.cmpi eq, %4, %19 : vector<8x128xi32>
    %cst_6 = arith.constant 0.000000e+00 : f32
    %21 = vector.broadcast %cst_6 : f32 to vector<8x128xf32>
    %22 = arith.select %20, %3, %21 : vector<8x128xi1>, vector<8x128xf32>
    %cst_7 = arith.constant dense<0.000000e+00> : vector<8xf32>
    %23 = vector.multi_reduction <add>, %22, %cst_7 [1] : vector<8x128xf32> to vector<8xf32>
    %24 = vector.shape_cast %23 : vector<8xf32> to vector<8x1xf32>
    %cst_8 = arith.constant 0.000000e+00 : f32
    %25 = vector.broadcast %cst_8 : f32 to vector<8x128xf32>
    %26 = arith.select %6, %3, %25 : vector<8x128xi1>, vector<8x128xf32>
    %cst_9 = arith.constant dense<0.000000e+00> : vector<8xf32>
    %27 = vector.multi_reduction <add>, %26, %cst_9 [1] : vector<8x128xf32> to vector<8xf32>
    %28 = vector.shape_cast %27 : vector<8xf32> to vector<8x1xf32>
    %cst_10 = arith.constant 0.899999976 : f32
    %29 = vector.broadcast %cst_10 : f32 to vector<8x1xf32>
    %30 = arith.mulf %29, %24 : vector<8x1xf32>
    %31 = arith.subf %17, %30 : vector<8x1xf32>
    %cst_11 = arith.constant 3.200000e+01 : f32
    %32 = vector.broadcast %cst_11 : f32 to vector<8x1xf32>
    %33 = arith.divf %28, %32 : vector<8x1xf32>
    %cst_12 = arith.constant 1.000000e-01 : f32
    %34 = vector.broadcast %cst_12 : f32 to vector<8x1xf32>
    %35 = arith.mulf %34, %33 : vector<8x1xf32>
    %36 = arith.subf %31, %35 : vector<8x1xf32>
    %37 = tpu.iota {dimensions = array<i32: 0>} : vector<8x1xi32>
    %c1_i32 = arith.constant 1 : i32
    %38 = arith.muli %arg0, %c1_i32 : i32
    %39 = arith.addi %38, %arg1 : i32
    %c8_i32 = arith.constant 8 : i32
    %40 = arith.muli %39, %c8_i32 : i32
    %41 = vector.broadcast %40 : i32 to vector<8x1xi32>
    %42 = arith.addi %41, %37 : vector<8x1xi32>
    %c8_i32_13 = arith.constant 8 : i32
    %43 = vector.broadcast %c8_i32_13 : i32 to vector<8x1xi32>
    %44 = arith.cmpi slt, %42, %43 : vector<8x1xi32>
    %cst_14 = arith.constant 0.000000e+00 : f32
    %45 = vector.broadcast %cst_14 : f32 to vector<8x1xf32>
    %46 = arith.select %44, %36, %45 : vector<8x1xi1>, vector<8x1xf32>
    %47 = vector.shape_cast %46 : vector<8x1xf32> to vector<1x8x1xf32>
    %cst_15 = arith.constant dense<0.000000e+00> : vector<1xf32>
    %48 = vector.multi_reduction <add>, %47, %cst_15 [1, 2] : vector<1x8x1xf32> to vector<1xf32>
    %49 = vector.shape_cast %48 : vector<1xf32> to vector<1x1x1xf32>
    %50 = vector.extract %49[0, 0, 0] : f32 from vector<1x1x1xf32>
    %c0_16 = arith.constant 0 : index
    %c0_17 = arith.constant 0 : index
    %c0_18 = arith.constant 0 : index
    %51 = vector.load %arg4[%c0_16, %c0_17, %c0_18] : memref<1x8x128xf32, #tpu.memory_space<vmem>>, vector<1x8x128xf32>
    %52 = vector.broadcast %50 : f32 to vector<1x8x128xf32>
    %53 = arith.addf %51, %52 : vector<1x8x128xf32>
    %c0_19 = arith.constant 0 : index
    %c0_20 = arith.constant 0 : index
    %c0_21 = arith.constant 0 : index
    %54 = vector.load %arg4[%c0_19, %c0_20, %c0_21] : memref<1x8x128xf32, #tpu.memory_space<vmem>>, vector<1x8x128xf32>
    tpu.vector_store %arg4[%c0_19, %c0_20, %c0_21], %53 {strides = array<i32>} : memref<1x8x128xf32, #tpu.memory_space<vmem>>, vector<1x8x128xf32>,
    return
  }
  func.func @transform_0(%arg0: i32, %arg1: i32) -> (i32, i32) {
    %c1_i32 = arith.constant 1 : i32
    %0 = arith.muli %arg0, %c1_i32 : i32
    %1 = arith.addi %0, %arg1 : i32
    %c0_i32 = arith.constant 0 : i32
    %c0_i32_0 = arith.constant 0 : i32
    return %1, %c0_i32 : i32, i32
  }
  func.func @transform_1(%arg0: i32, %arg1: i32) -> (i32, i32) {
    %c1_i32 = arith.constant 1 : i32
    %0 = arith.muli %arg0, %c1_i32 : i32
    %1 = arith.addi %0, %arg1 : i32
    %c0_i32 = arith.constant 0 : i32
    %c0_i32_0 = arith.constant 0 : i32
    return %1, %c0_i32 : i32, i32
  }
  func.func @transform_2(%arg0: i32, %arg1: i32) -> (i32, i32, i32) {
    %c0_i32 = arith.constant 0 : i32
    %c0_i32_0 = arith.constant 0 : i32
    %c0_i32_1 = arith.constant 0 : i32
    return %arg0, %c0_i32, %c0_i32_0 : i32, i32, i32
  }
}

</mosaic_0001>

<bundles_post_ra>
// kernel: tpu_custom_call.1
= control target key start
LH: loop header
LB: loop body
LE: loop exit
PB: predicated region body
PF: predicated region fallthrough
CT: control target
= control target key end

     0   :  { %7 = vsyncpa [#allocation3], 0  ;;  %s627_s0 = inlined_call_operand.vmem [shape: f32[16,128], index: 0, kind: input, shape index: {}]   ;;  %s628_s1 = inlined_call_operand.vmem [shape: s32[16,1], index: 1, kind: input, shape index: {}]   ;;  %s629_s2 = inlined_call_operand.hbm [shape: f32[2,8,128], index: 2, kind: output, shape index: {}]  }
   0x1   :  { %9 = vsyncpa [#allocation3 + $0x1], 0  ;;  %s509_s9 = smov 0   ;;  %s511_s10 = smov 0  }
   0x2   :  { %s513_s11 = smov 0   ;;  %s515_s12 = smov 0  }
   0x3   :  { %s517_s13 = smov 0   ;;  %s519_s14 = smov 0  }
   0x4 LB: > { %s335_s15 = sadd.s32 4294967295, %s490_s14   ;;  %s336_s16 = sadd.s32 4294967294, %s490_s14   ;;  %s490_s14 = sphi %s519_s14, %s15_s14   ;;  %s486_s13 = sphi %s517_s13, %s636_s13   ;;  %s482_s12 = sphi %s515_s12, %s635_s12   ;;  %s478_s11 = sphi %s513_s11, %s634_s11   ;;  %s474_s10 = sphi %s511_s10, %s633_s10   ;;  %s470_s9 = sphi %s509_s9, %s632_s9  }
   0x5   : > { %s27_s17 = sadd.s32 1, %s486_s13  ;;  %s90_s18 = sadd.s32 1, %s478_s11 }
   0x6   : > { %p29_p0 = scmp.ge.s32.totalorder %s27_s17, 2  ;;  %p100_p1 = scmp.ne.s32.totalorder %s478_s11, %s474_s10 }
   0x7   : > { %p101_p2 = scmp.eq.s32.totalorder %s335_s15, 1  ;;  %p106_p3 = scmp.ne.s32.totalorder %s474_s10, %s470_s9 }
   0x8   : > { %s638_s17 = smov (%p29_p0, %s27_s17), 0  ;;  %p107_p5 = scmp.eq.s32.totalorder %s336_s16, 1 }
   0x9   : > { %p549_p4 = por %p101_p2, %p100_p1  ;;  %s87_s20 = ssub.s32 %s486_s13, %s638_s17 }
   0xa   : > { %p339_p6 = scmp.ge.s32.totalorder %s490_s14, 1  ;;  %p88_p7 = scmp.eq.s32.totalorder %s87_s20, 0 }
   0xb   : > { %p556_p8 = por %p107_p5, %p106_p3  ;;  %p143_p9 = scmp.lt.s32.totalorder %s490_s14, 3 }
   0xc   : > { %s562_s22 = scalar_select %p88_p7, %s478_s11, %s90_s18  }
   0xd   : > { %p144_p10 = pnand %p339_p6, %p143_p9 }
   0xe   : > { %p171_p11 = scmp.lt.s32.totalorder (!%p144_p10), %s482_s12, 1  ;;  %v188_v0 = vlaneseq (!%p144_p10)  ;;  %v492_v1 = vmov (!%p144_p10), 0   ;;  %s343_s3 = sshll.u32 (!%p144_p10), %s482_s12, 3  ;;  %vm227_vm3 = vcmask (!%p144_p10), 7168  }
   0xf   : > { %147 = sbr.rel (%p144_p10) target bundleno = 567 (0x237), region = 28  ;;  %407 = vset.pattern.permute.xlu0 (!%p144_p10), %v492_v1  ;;  %v223_v18 = vstv (!%p144_p10), %s343_s3  ;;  %s167_s4 = sand.u32 (!%p144_p10), 1, %s474_s10  }
  0x10   : > { %v189_v2 = vand.u32 (!%p144_p10), 127, %v188_v0  ;;  %v220_v16 = vshrl.u32 (!%p144_p10), %v188_v0, 7  ;;  %s340_s5 = sshll.u32 (!%p144_p10), %s167_s4, 3  ;;  %s345_s6 = sshll.u32 (!%p144_p10), %s482_s12, 7 }
  0x11   : > { %s169_s7 = scalar_lea.vmem (!%p144_p10), [#allocation2], %s340_s5  ;;  %s580_s20 = scalar_lea.hbm (!%p144_p10), %s629_s2, %s345_s6 }
  0x12   : > { %vm190_vm0 = vcmp.lt.s32.totalorder (!%p144_p10), %v189_v2, 32  ;;  %v224_v21 = vadd.s32 (!%p144_p10), %v223_v18, %v220_v16  ;;  %s256_s8 = sshll.u32 (!%p144_p10), %s169_s7, 4  ;;  %s582_s8 = int_to_ptr.vmem [resolvable:$true] %s256_s8 }
  0x14   : > { %vm225_vm2 = vcmp.lt.s32.totalorder (!%p144_p10), %v224_v21, 8 }
  0x16   : > { %s172_s23 = scalar_select %p171_p11, %s482_s12, 1 }
  0x17   : > { %s493_s12 = smov [#allocation2]  }
  0x18   : > { %s341_s24 = sshll.u32 %s172_s23, 3  ;;  %s243_s23 = scalar_lea.sflag [#allocation3], %s167_s4 }
  0x19   : > { %s174_s27 = scalar_lea.vmem %s627_s0, %s341_s24  ;;  %s180_s30 = scalar_lea.vmem %s628_s1, %s341_s24 }
  0x1a   : > { %v187_v3 = vld [vmem:[%s174_s27] sm:$0xff]  ;;  %s412_s24 = scalar_lea.vmem %s582_s8, 128  ;;  %s416_s25 = sshll.u32 %s493_s12, 4  ;;  %s417_s25 = int_to_ptr.vmem [resolvable:$false] %s416_s25 }
  0x1b   : > { %v191_v4 = vsel %vm190_vm0, %v187_v3, -1e+30  ;;  %v202_v5 = vld [vmem:[%s180_s30] sm:$0xff]  ;;  %v210_v12 = vsel %vm190_vm0, %v187_v3, 0.0  ;;  %p413_p12 = scmp.ne.s32.totalorder %s582_s8, %s412_s24  ;;  %s418_s26 = scalar_lea.vmem %s417_s25, 256 }
  0x1c   : > { %192 = vmax.xlane.f32.xlu0 %v191_v4  ;;  %p419_p1 = scmp.lt.s32.totalorder %s582_s8, %s417_s25  ;;  %p420_p2 = scmp.lt.s32.totalorder %s418_s26, %s412_s24 }
  0x1d   : > { %p414_p13 = pnand %p413_p12, %p549_p4 }
  0x1e   : > { %p421_p3 = por %p420_p2, %p419_p1 }
  0x1f   : > { %p415_p0 = pneg %p414_p13 }
  0x21   : > { %p422_p5 = pnand %p421_p3, %p415_p0 }
  0x32   : > { %204 = vperm.xlu0 %407, %v202_v5  }
  0xa9   : > { %v193_v6 = vpop.xlane.xlu0 %192 }
  0xaa   : > { %v194_v7 = vsub.f32 %v191_v4, %v193_v6 }
  0xac   : > { %v195_v8 = vmul.f32 1.442695, %v194_v7 }
  0xae   : > { %408 = vpow2.f32 %v195_v8 }
  0xb1   : > { %v205_v9 = vpop.permute.xlu0 %204 }
  0xb2   : > { %vm206_vm1 = vcmp.eq.s32.totalorder %v189_v2, %v205_v9 }
  0xb3   : > { %v207_v11 = vsel %vm206_vm1, %v187_v3, 0.0 }
  0xb8   : > { %v409_v10 = vpop.eup %408 }
  0xb9   : > { %197 = vadd.xlane.f32.xlu1 %v409_v10 }
  0xbd   : > { %208 = vadd.xlane.f32.xlu1 %v207_v11 }
  0xc1   : > { %211 = vadd.xlane.f32.xlu1 %v210_v12 }
 0x146   : > { %v198_v13 = vpop.xlane.xlu1 %197 }
 0x147   : > { %410 = vlog2.f32 %v198_v13 }
 0x14a   : > { %v209_v14 = vpop.xlane.xlu1 %208 }
 0x14b   : > { %v213_v23 = vmul.f32 0.9, %v209_v14 }
 0x14e   : > { %v212_v15 = vpop.xlane.xlu1 %211 }
 0x14f   : > { %v216_v17 = vmul.f32 0.03125, %v212_v15 }
 0x151   : > { %v411_v19 = vpop.eup %410  ;;  %v217_v24 = vmul.f32 0.1, %v216_v17 }
 0x152   : > { %v200_v20 = vmul.f32 0.6931472, %v411_v19 }
 0x154   : > { %v201_v22 = vadd.f32 %v200_v20, %v193_v6 }
 0x156   : > { %v214_v25 = vsub.f32 %v201_v22, %v213_v23 }
 0x158   : > { %v218_v26 = vsub.f32 %v214_v25, %v217_v24 }
 0x15a   : > { %v226_v27 = vsel %vm225_vm2, %v218_v26, 0.0 }
 0x15b   : > { %v228_v28 = vsel %vm227_vm3, %v226_v27, 0.0 }
 0x15c   : > { %229 = vadd.xlane.f32.xlu1 %v228_v28 }
 0x1e9   : > { %v230_v29 = vpop.xlane.xlu1 %229 }
 0x1ea   : > { %v231_v30 = vrot.slane %v230_v29, 4 }
 0x1ec   : > { %v232_v31 = vadd.f32 %v231_v30, %v230_v29 }
 0x1ee   : > { %v233_v32 = vrot.slane %v232_v31, 2 }
 0x1f0   : > { %v234_v33 = vadd.f32 %v233_v32, %v232_v31 }
 0x1f2   : > { %v235_v34 = vrot.slane %v234_v33, 1 }
 0x1f4   : > { %v236_v35 = vadd.f32 %v235_v34, %v234_v33 }
 0x1f6   : > { %348 = vpush %v236_v35 }
 0x227   : > { %s349_s15 = spop %348 }
 0x228   : > { %v239_v36 = vstv %s349_s15 }
 0x229   : > { %241 = vst [vmem:[%s169_s7] sm:$0xff] %v239_v36 }
 0x22a   : > { %425 = shalt.err (!%p422_p5)
}
 0x22b   : > { %s426_s27 = scalar_lea.hbm %s580_s20, 128  ;;  %s430_s30 = scalar_lea.hbm %s629_s2, 256 }
 0x22c   : > { %p427_p6 = scmp.ne.s32.totalorder %s580_s20, %s426_s27  ;;  %p431_p10 = scmp.lt.u32.totalorder %s580_s20, %s629_s2 }
 0x22d   : > { %p432_p11 = scmp.lt.u32.totalorder %s430_s30, %s426_s27  ;;  %p434_p13 = scmp.lt.u32.totalorder %s426_s27, %s580_s20 }
 0x22e   : > { %p428_p7 = pnand %p427_p6, %p549_p4 }
 0x22f   : > { %p433_p12 = por %p432_p11, %p431_p10 }
 0x230   : > { %p429_p9 = pneg %p428_p7 }
 0x231   : > { %p435_p0 = por %p434_p13, %p433_p12 }
 0x233   : > { %p436_p1 = pnand %p435_p0, %p429_p9 }
 0x235   : > { %439 = shalt.err (!%p436_p1)
}
 0x236   : > { %350 = dma.vmem_to_hbm [thread:$0]  (%p549_p4), %s582_s8, 128, %s580_s20, %s243_s23  }
 0x237 PF: > { %p356_p2 = scmp.ge.s32.totalorder %s490_s14, 2  ;;  %s268_s5 = sand.u32 1, %s470_s9  }
 0x238   : > { %s269_s6 = scalar_lea.sflag [#allocation3], %s268_s5 }
 0x239   : > { %p353_p3 = pnand %p356_p2, %p556_p8 }
 0x23b   : > { %465 = dma.done.wait (!%p353_p3), %s269_s6, 128  }
 0x23c   : > { %467 = vsyncadd (!%p353_p3), %s269_s6, 4294967168  ;;  %s15_s14 = sadd.s32 1, %s490_s14   ;;  %s632_s9 = smov %s474_s10 }
 0x23d   : > { %p12_p5 = scmp.ge.s32.totalorder %s15_s14, 4   ;;  %s633_s10 = smov %s478_s11 }
 0x23e   : > { %s634_s11 = smov %s562_s22  ;;  %s635_s12 = smov %s486_s13 }
 0x23f   : > { %s636_s13 = smov %s638_s17  ;;  %14 = sbr.rel (!%p12_p5) target bundleno = 4 (0x4), region = 70 }
 0x246   :  { %274 = vsyncpa [#allocation3], 1 }
 0x247   :  { %276 = vsyncpa [#allocation3 + $0x1], 1 }

</bundles_post_ra>
